<compile_context>
chip_gen: v5e
topology: v5e:2x2
jax: 0.10.0
libtpu: 0.0.40
codegen_flags: <defaults>
</compile_context>

<pallas_src>
import functools

import jax
import jax.numpy as jnp
from jax import lax
from jax.experimental import pallas as pl
from jax.experimental.pallas import tpu as pltpu


def rnn_loop_kernel(xs_ref, w_ref, b_ref, h_ref, gated_vmem, *, chunk_t, rem_t):
    """One grid step == one chunk of timesteps.

    xs_ref:     (chunk_t, 12)  flattened timesteps of this chunk
    w_ref:      (12, 12)       block-diag(W^T, W^T, W^T) — Linear hoisted/batched
    b_ref:      (1, 12)        bias tiled across the 3 rows
    h_ref:      (1, 12)        output block; constant index map -> VMEM-resident
                               carry of h across chunks (written back once at end)
    gated_vmem: (chunk_t, 12)  VMEM staging of the gated Linear outputs
    chunk_t:    static full-chunk trip count
    rem_t:      static trip count of the LAST chunk (== chunk_t if T % Tc == 0)
    """
    c = pl.program_id(0)
    last = pl.num_programs(0) - 1

    @pl.when(c == 0)
    def _():
        h_ref[...] = jnp.zeros_like(h_ref)

    # ---- Batched phase (off the serial chain): Linear + decision gate for the
    # whole chunk. One MXU matmul + one lane reduction, staged to VMEM once.
    xs = xs_ref[...]                                                  # (Tc, 12)
    z = jnp.dot(xs, w_ref[...], preferred_element_type=jnp.float32) + b_ref[...]
    s = jnp.sum(z, axis=-1, keepdims=True)                            # (Tc, 1)
    gated_vmem[...] = jnp.where(s > 0, z, -z)                         # (Tc, 12)

    # ---- Serial phase: h = tanh(g_t + h). fori_loop keeps the live set to
    # (one gated row + h); unroll=8 gives the scheduler cross-iteration view.
    def run(n):
        def body(t, h):
            g = gated_vmem[pl.ds(t, 1), :]                            # (1, 12)
            return jnp.tanh(g + h)

        h_ref[...] = lax.fori_loop(0, n, body, h_ref[...], unroll=min(8, n))

    if rem_t == chunk_t:
        # Every chunk is full: single unmasked loop, no branching at all.
        run(chunk_t)
    else:
        # Only the last chunk is short; both trip counts are static, so there
        # is never a per-step mask on the add->tanh chain.
        @pl.when(c != last)
        def _():
            run(chunk_t)

        @pl.when(c == last)
        def _():
            run(rem_t)


def my_rnn_loop(xs, w, b, *, chunk=4096):
    """xs: (T, 3, 4) f32; w: (4, 4) f32; b: (1, 4) f32 -> (y, h), each (3, 4)."""
    T, R, F = xs.shape                       # (T, 3, 4)
    D = R * F                                # 12 lanes per flattened timestep

    # Hoisted, one-time parameter prep (outside the recurrence): pre-transpose
    # W and embed it block-diagonally so the per-timestep Linear over the
    # flattened (T, 12) layout is a single batched matmul per chunk.
    wt = w.T.astype(jnp.float32)
    w_big = jnp.zeros((D, D), dtype=jnp.float32)
    for i in range(R):
        w_big = w_big.at[i * F:(i + 1) * F, i * F:(i + 1) * F].set(wt)
    b_big = jnp.tile(b.reshape(1, F).astype(jnp.float32), (1, R))     # (1, 12)

    xs_flat = xs.reshape(T, D).astype(jnp.float32)

    # Time-chunked grid. For multi-chunk tiling, Tc must be sublane-divisible
    # (multiple of 8); a single chunk equal to the full extent is always legal.
    Tc = min(T, max(1, chunk))
    if Tc < T:
        Tc = ((Tc + 7) // 8) * 8
        Tc = min(Tc, T)
    num_chunks = pl.cdiv(T, Tc)
    T_pad = num_chunks * Tc
    if T_pad != T:
        xs_flat = jnp.pad(xs_flat, ((0, T_pad - T), (0, 0)))
    rem = T - (num_chunks - 1) * Tc          # static trip count of last chunk

    kernel = functools.partial(rnn_loop_kernel, chunk_t=Tc, rem_t=rem)

    h_flat = pl.pallas_call(
        kernel,
        out_shape=jax.ShapeDtypeStruct((1, D), jnp.float32),
        grid_spec=pltpu.PrefetchScalarGridSpec(
            num_scalar_prefetch=0,
            grid=(num_chunks,),
            in_specs=[
                pl.BlockSpec((Tc, D), lambda c: (c, 0)),   # chunk of timesteps
                pl.BlockSpec((D, D), lambda c: (0, 0)),    # block-diag W^T
                pl.BlockSpec((1, D), lambda c: (0, 0)),    # tiled bias
            ],
            # Constant index map -> output block stays VMEM-resident across the
            # whole grid and doubles as the h carry (no separate scratch).
            out_specs=pl.BlockSpec((1, D), lambda c: (0, 0)),
            scratch_shapes=[pltpu.VMEM((Tc, D), jnp.float32)],   # gated staging
        ),
        compiler_params=pltpu.CompilerParams(
            # The h-carry across chunks is inherently serial.
            dimension_semantics=("arbitrary",),
            # Explicit limit so larger chunks also fit under v5e's 16 MiB
            # scoped-VMEM default (Tc=4096 needs ~6-7 MiB total here).
            vmem_limit_bytes=32 * 1024 * 1024,
        ),
    )(xs_flat, w_big, b_big)

    h = h_flat.reshape(R, F)
    return h, h    # (y, h) are identical; duplicated at the JAX level


def _ref_rnn_loop(xs, w, b):
    """Pure-JAX reference reproducing the PyTorch semantics."""
    def step(h, x):
        z = x @ w.T + b[0]
        z = jnp.where(jnp.sum(z) > 0, z, -z)
        new_h = jnp.tanh(z + h)
        return new_h, None

    h0 = jnp.zeros((3, 4), jnp.float32)
    h_final, _ = jax.lax.scan(step, h0, xs)
    return h_final, h_final


if __name__ == "__main__":
    key = jax.random.PRNGKey(0)
    k_x, k_w, k_b = jax.random.split(key, 3)

    T = 8  # sequence length
    xs = jax.random.normal(k_x, (T, 3, 4), dtype=jnp.float32)

    # Deterministic init mimicking torch.nn.Linear(4, 4):
    # uniform(-1/sqrt(4), 1/sqrt(4)) for weight and bias.
    bound = 0.5
    w = jax.random.uniform(k_w, (4, 4), jnp.float32, -bound, bound)
    b = jax.random.uniform(k_b, (1, 4), jnp.float32, -bound, bound)

    y, h = my_rnn_loop(xs, w, b)
    y = jax.block_until_ready(y)
    h = jax.block_until_ready(h)

    y_ref, h_ref = _ref_rnn_loop(xs, w, b)
    assert jnp.allclose(y, y_ref, atol=1e-5), "y mismatch vs reference"
    assert jnp.allclose(h, h_ref, atol=1e-5), "h mismatch vs reference"

    # Exercise the multi-chunk path with a short static-remainder last chunk
    # (T not a multiple of the chunk size): 2 chunks of 8, last runs 5 steps.
    T2 = 13
    xs2 = jax.random.normal(jax.random.PRNGKey(1), (T2, 3, 4), dtype=jnp.float32)
    y2, h2 = my_rnn_loop(xs2, w, b, chunk=8)
    y2 = jax.block_until_ready(y2)
    y2_ref, _ = _ref_rnn_loop(xs2, w, b)
    assert jnp.allclose(y2, y2_ref, atol=1e-5), "chunked-path mismatch vs reference"

    # Also exercise the non-multiple-of-8 user chunk (robustness fix): Tc is
    # rounded up to 8 internally, remainder handled without per-step masking.
    y3, _ = my_rnn_loop(xs2, w, b, chunk=5)
    y3 = jax.block_until_ready(y3)
    assert jnp.allclose(y3, y2_ref, atol=1e-5), "rounded-chunk mismatch vs reference"

    print("KERNEL_OK")
</pallas_src>

<mosaic_0001>
module attributes {stable_mosaic.version = 11 : i64} {
  func.func @rnn_loop_kernel(%arg0: i32, %arg1: memref<8x12xf32, #tpu.memory_space<vmem>>, %arg2: memref<12x12xf32, #tpu.memory_space<vmem>>, %arg3: memref<1x12xf32, #tpu.memory_space<vmem>>, %arg4: memref<1x12xf32, #tpu.memory_space<vmem>>, %arg5: memref<8x12xf32, #tpu.memory_space<vmem>>) attributes {dimension_semantics = [#tpu.dimension_semantics<arbitrary>], iteration_bounds = array<i64: 1>, scalar_prefetch = 0 : i64, scratch_operands = 1 : i64, tpu.core_type = #tpu.core_type<tc>, window_params = [{transform_indices = @transform_0, window_bounds = array<i64: 8, 12>}, {pipeline_mode = #tpu.pipeline_mode<synchronous>, transform_indices = @transform_1, window_bounds = array<i64: 12, 12>}, {pipeline_mode = #tpu.pipeline_mode<synchronous>, transform_indices = @transform_2, window_bounds = array<i64: 1, 12>}, {pipeline_mode = #tpu.pipeline_mode<synchronous>, transform_indices = @transform_3, window_bounds = array<i64: 1, 12>}]} {
    %c0_i32 = arith.constant 0 : i32
    %0 = arith.cmpi eq, %arg0, %c0_i32 : i32
    %1 = arith.extui %0 : i1 to i32
    %c0_i32_0 = arith.constant 0 : i32
    %2 = arith.cmpi ne, %1, %c0_i32_0 : i32
    scf.if %2 {
      %cst_24 = arith.constant 0.000000e+00 : f32
      %53 = vector.broadcast %cst_24 : f32 to vector<1x12xf32>
      %c0_25 = arith.constant 0 : index
      %c0_26 = arith.constant 0 : index
      %54 = vector.load %arg4[%c0_25, %c0_26] : memref<1x12xf32, #tpu.memory_space<vmem>>, vector<1x12xf32>
      tpu.vector_store %arg4[%c0_25, %c0_26], %53 {strides = array<i32>} : memref<1x12xf32, #tpu.memory_space<vmem>>, vector<1x12xf32>,
    } else {
    }
    %c0 = arith.constant 0 : index
    %c0_1 = arith.constant 0 : index
    %3 = vector.load %arg1[%c0, %c0_1] : memref<8x12xf32, #tpu.memory_space<vmem>>, vector<8x12xf32>
    %c0_2 = arith.constant 0 : index
    %c0_3 = arith.constant 0 : index
    %4 = vector.load %arg2[%c0_2, %c0_3] : memref<12x12xf32, #tpu.memory_space<vmem>>, vector<12x12xf32>
    %cst = arith.constant dense<0.000000e+00> : vector<8x12xf32>
    %5 = tpu.matmul %3, %4, %cst {dimension_numbers = #tpu.dot_dimension_numbers<[1], [0], [0], [1], [0, 0, 1, 1], [], []>} : vector<8x12xf32>, vector<12x12xf32>, vector<8x12xf32> -> vector<8x12xf32>
    %c0_4 = arith.constant 0 : index
    %c0_5 = arith.constant 0 : index
    %6 = vector.load %arg3[%c0_4, %c0_5] : memref<1x12xf32, #tpu.memory_space<vmem>>, vector<1x12xf32>
    %7 = vector.broadcast %6 : vector<1x12xf32> to vector<8x12xf32>
    %8 = arith.addf %5, %7 : vector<8x12xf32>
    %cst_6 = arith.constant dense<0.000000e+00> : vector<8xf32>
    %9 = vector.multi_reduction <add>, %8, %cst_6 [1] : vector<8x12xf32> to vector<8xf32>
    %10 = vector.shape_cast %9 : vector<8xf32> to vector<8x1xf32>
    %cst_7 = arith.constant 0.000000e+00 : f32
    %11 = vector.broadcast %cst_7 : f32 to vector<8x1xf32>
    %12 = arith.cmpf ogt, %10, %11 : vector<8x1xf32>
    %cst_8 = arith.constant 0.000000e+00 : f32
    %13 = vector.broadcast %cst_8 : f32 to vector<8x12xf32>
    %14 = arith.subf %13, %8 : vector<8x12xf32>
    %15 = vector.shape_cast %12 : vector<8x1xi1> to vector<8x1xi1>
    %16 = vector.broadcast %15 : vector<8x1xi1> to vector<8x12xi1>
    %17 = arith.select %16, %8, %14 : vector<8x12xi1>, vector<8x12xf32>
    %c0_9 = arith.constant 0 : index
    %c0_10 = arith.constant 0 : index
    %18 = vector.load %arg5[%c0_9, %c0_10] : memref<8x12xf32, #tpu.memory_space<vmem>>, vector<8x12xf32>
    tpu.vector_store %arg5[%c0_9, %c0_10], %17 {strides = array<i32>} : memref<8x12xf32, #tpu.memory_space<vmem>>, vector<8x12xf32>,
    %c0_11 = arith.constant 0 : index
    %c0_12 = arith.constant 0 : index
    %19 = vector.load %arg4[%c0_11, %c0_12] : memref<1x12xf32, #tpu.memory_space<vmem>>, vector<1x12xf32>
    %c0_i32_13 = arith.constant 0 : i32
    %20 = arith.index_cast %c0_i32_13 : i32 to index
    %c0_14 = arith.constant 0 : index
    %21 = vector.load %arg5[%20, %c0_14] : memref<8x12xf32, #tpu.memory_space<vmem>>, vector<1x12xf32>
    %22 = arith.addf %21, %19 : vector<1x12xf32>
    %23 = math.tanh %22 : vector<1x12xf32>
    %c1_i32 = arith.constant 1 : i32
    %24 = arith.index_cast %c1_i32 : i32 to index
    %c0_15 = arith.constant 0 : index
    %25 = vector.load %arg5[%24, %c0_15] : memref<8x12xf32, #tpu.memory_space<vmem>>, vector<1x12xf32>
    %26 = arith.addf %25, %23 : vector<1x12xf32>
    %27 = math.tanh %26 : vector<1x12xf32>
    %c2_i32 = arith.constant 2 : i32
    %28 = arith.index_cast %c2_i32 : i32 to index
    %c0_16 = arith.constant 0 : index
    %29 = vector.load %arg5[%28, %c0_16] : memref<8x12xf32, #tpu.memory_space<vmem>>, vector<1x12xf32>
    %30 = arith.addf %29, %27 : vector<1x12xf32>
    %31 = math.tanh %30 : vector<1x12xf32>
    %c3_i32 = arith.constant 3 : i32
    %32 = arith.index_cast %c3_i32 : i32 to index
    %c0_17 = arith.constant 0 : index
    %33 = vector.load %arg5[%32, %c0_17] : memref<8x12xf32, #tpu.memory_space<vmem>>, vector<1x12xf32>
    %34 = arith.addf %33, %31 : vector<1x12xf32>
    %35 = math.tanh %34 : vector<1x12xf32>
    %c4_i32 = arith.constant 4 : i32
    %36 = arith.index_cast %c4_i32 : i32 to index
    %c0_18 = arith.constant 0 : index
    %37 = vector.load %arg5[%36, %c0_18] : memref<8x12xf32, #tpu.memory_space<vmem>>, vector<1x12xf32>
    %38 = arith.addf %37, %35 : vector<1x12xf32>
    %39 = math.tanh %38 : vector<1x12xf32>
    %c5_i32 = arith.constant 5 : i32
    %40 = arith.index_cast %c5_i32 : i32 to index
    %c0_19 = arith.constant 0 : index
    %41 = vector.load %arg5[%40, %c0_19] : memref<8x12xf32, #tpu.memory_space<vmem>>, vector<1x12xf32>
    %42 = arith.addf %41, %39 : vector<1x12xf32>
    %43 = math.tanh %42 : vector<1x12xf32>
    %c6_i32 = arith.constant 6 : i32
    %44 = arith.index_cast %c6_i32 : i32 to index
    %c0_20 = arith.constant 0 : index
    %45 = vector.load %arg5[%44, %c0_20] : memref<8x12xf32, #tpu.memory_space<vmem>>, vector<1x12xf32>
    %46 = arith.addf %45, %43 : vector<1x12xf32>
    %47 = math.tanh %46 : vector<1x12xf32>
    %c7_i32 = arith.constant 7 : i32
    %48 = arith.index_cast %c7_i32 : i32 to index
    %c0_21 = arith.constant 0 : index
    %49 = vector.load %arg5[%48, %c0_21] : memref<8x12xf32, #tpu.memory_space<vmem>>, vector<1x12xf32>
    %50 = arith.addf %49, %47 : vector<1x12xf32>
    %51 = math.tanh %50 : vector<1x12xf32>
    %c8_i32 = arith.constant 8 : i32
    %c0_22 = arith.constant 0 : index
    %c0_23 = arith.constant 0 : index
    %52 = vector.load %arg4[%c0_22, %c0_23] : memref<1x12xf32, #tpu.memory_space<vmem>>, vector<1x12xf32>
    tpu.vector_store %arg4[%c0_22, %c0_23], %51 {strides = array<i32>} : memref<1x12xf32, #tpu.memory_space<vmem>>, vector<1x12xf32>,
    return
  }
  func.func @transform_0(%arg0: i32) -> (i32, i32) {
    %c0_i32 = arith.constant 0 : i32
    %c0_i32_0 = arith.constant 0 : i32
    return %arg0, %c0_i32 : i32, i32
  }
  func.func @transform_1(%arg0: i32) -> (i32, i32) {
    %c0_i32 = arith.constant 0 : i32
    %c0_i32_0 = arith.constant 0 : i32
    %c0_i32_1 = arith.constant 0 : i32
    return %c0_i32, %c0_i32_0 : i32, i32
  }
  func.func @transform_2(%arg0: i32) -> (i32, i32) {
    %c0_i32 = arith.constant 0 : i32
    %c0_i32_0 = arith.constant 0 : i32
    %c0_i32_1 = arith.constant 0 : i32
    return %c0_i32, %c0_i32_0 : i32, i32
  }
  func.func @transform_3(%arg0: i32) -> (i32, i32) {
    %c0_i32 = arith.constant 0 : i32
    %c0_i32_0 = arith.constant 0 : i32
    %c0_i32_1 = arith.constant 0 : i32
    return %c0_i32, %c0_i32_0 : i32, i32
  }
}

</mosaic_0001>

<bundles_post_ra>
// kernel: tpu_custom_call.1
= control target key start
LH: loop header
LB: loop body
LE: loop exit
PB: predicated region body
PF: predicated region fallthrough
CT: control target
= control target key end

     0   :  { %8 = vsyncpa [#allocation4], 0  ;;  %s283_s0 = inlined_call_operand.hbm [shape: f32[8,12], index: 0, kind: input, shape index: {}]   ;;  %s284_s1 = inlined_call_operand.hbm [shape: f32[12,12], index: 1, kind: input, shape index: {}]   ;;  %s285_s2 = inlined_call_operand.vmem [shape: f32[1,12], index: 2, kind: input, shape index: {}]   ;;  %s286_s3 = inlined_call_operand.hbm [shape: f32[1,12], index: 3, kind: output, shape index: {}]  }
   0x1   :  { %9 = vsyncpa [#allocation7], 0 }
   0x2   :  { %10 = vsyncpa [#allocation5], 0  ;;  %s16_s14 = sshll.u32 %s283_s0, 4  ;;  %s243_s15 = smov [#allocation3]   ;;  %s17_s14 = int_to_ptr.hbm [resolvable:$true] %s16_s14 }
   0x3   :  { %s18_s16 = sshll.u32 %s243_s15, 4  ;;  %s26_s19 = sshll.u32 %s284_s1, 4  ;;  %s19_s16 = int_to_ptr.vmem [resolvable:$true] %s18_s16  ;;  %s27_s19 = int_to_ptr.hbm [resolvable:$true] %s26_s19 }
   0x4   :  { %21 = dma.hbm_to_vmem [thread:$0]  %s17_s14, 128, %s19_s16, [#allocation4]  }
   0x5   :  { %s244_s20 = smov [#allocation6]   ;;  %s245_s22 = smov 128  }
   0x6   :  { %s28_s21 = sshll.u32 %s244_s20, 4  ;;  %s246_s23 = smov 8   ;;  %s29_s21 = int_to_ptr.vmem [resolvable:$true] %s28_s21 }
   0x7   :  { %34 = dma.hbm_to_vmem [thread:$0]  %s27_s19, 256, %s29_s21, [#allocation7], %s245_s22, %s245_s22, %s246_s23  }
   0x8   :  { %237 = dma.done.wait [#allocation4], 128  }
   0x9   :  { %238 = vsyncadd [#allocation4], 4294967168 }
   0xa   :  { %239 = dma.done.wait [#allocation7], 256  }
   0xb   :  { %240 = vsyncadd [#allocation7], 4294967040  ;;  %vm62_vm0 = vcmask 1043456   ;;  %v53_v0 = vld [vmem:[#allocation6 + $0x8] sm:$0xf]  ;;  %v52_v1 = vld [vmem:[#allocation6] sm:$0xff] }
   0xc   :  { %140 = vmatpush.msk.msra.mxu0 %vm62_vm0, %v53_v0  ;;  %v51_v2 = vld [vmem:[#allocation3] sm:$0xff]  ;;  %vm58_vm1 = vcmask 97280   ;;  %v148_v3 = vld [vmem:[%s285_s2] ss:$0 sm:$0xff]  ;;  %vm49_vm2 = vcmask 90112   ;;  %v247_v7 = vmov 0.0  }
   0xd   :  { %50 = vst.msk [vmem:[#allocation8] sm:$0x1] %vm49_vm2, %v247_v7  ;;  %s248_s2 = smov [#allocation8]   ;;  %s129_s27 = sshll.u32 %s286_s3, 4  ;;  %s130_s27 = int_to_ptr.hbm [resolvable:$true] %s129_s27 }
   0xe   :  { %81 = vmatpush.msra.mxu0 %v52_v1  ;;  %s127_s24 = sshll.u32 %s248_s2, 4  ;;  %s128_s24 = int_to_ptr.vmem [resolvable:$true] %s127_s24 }
   0xf   :  { %141 = vmatmul.msk.f32.vlgmr.msra.gmra.mxu0 %vm58_vm1, %v51_v2 }
  0x14   :  { %v95_v11 = vld [vmem:[#allocation8] sm:$0x1] }
  0x8c   :  { %v83_v4 = vpop.f32.mrf.mxu0 }
  0x8d   :  { %v84_v5 = vadd.f32 %v148_v3, %v83_v4 }
  0x8f   :  { %v86_v6 = vsel %vm58_vm1, %v84_v5, 0.0  ;;  %v90_v8 = vsub.f32 0.0, %v84_v5 }
  0x90   :  { %87 = vadd.xlane.f32.xlu0 %v86_v6 }
 0x103   :  { %v88_v9 = vpop.xlane.xlu0 %87 }
 0x104   :  { %vm89_vm3 = vcmp.gt.f32.partialorder %v88_v9, 0.0 }
 0x105   :  { %v93_v10 = vsel %vm89_vm3, %v84_v5, %v90_v8 }
 0x106   :  { %94 = vst.msk [vmem:[#allocation2] sm:$0xff] %vm58_vm1, %v93_v10 }
 0x10d   :  { %v96_v12 = vld [vmem:[#allocation2] sm:$0x1]  ;;  %v99_v15 = vld [vmem:[#allocation2 + $0x1] sm:$0x1]  ;;  %v102_v18 = vld [vmem:[#allocation2 + $0x2] sm:$0x1] }
 0x10e   :  { %v97_v13 = vadd.f32 %v96_v12, %v95_v11  ;;  %v105_v21 = vld [vmem:[#allocation2 + $0x3] sm:$0x1]  ;;  %v108_v24 = vld [vmem:[#allocation2 + $0x4] sm:$0x1]  ;;  %v111_v27 = vld [vmem:[#allocation2 + $0x5] sm:$0x1] }
 0x10f   :  { %v114_v30 = vld [vmem:[#allocation2 + $0x6] sm:$0x1]  ;;  %v117_v33 = vld [vmem:[#allocation2 + $0x7] sm:$0x1] }
 0x110   :  { %149 = vtanh.f32 %v97_v13 }
 0x116   :  { %v150_v14 = vpop.eup %149 }
 0x117   :  { %v100_v16 = vadd.f32 %v150_v14, %v99_v15 }
 0x119   :  { %151 = vtanh.f32 %v100_v16 }
 0x11f   :  { %v152_v17 = vpop.eup %151 }
 0x120   :  { %v103_v19 = vadd.f32 %v152_v17, %v102_v18 }
 0x122   :  { %153 = vtanh.f32 %v103_v19 }
 0x128   :  { %v154_v20 = vpop.eup %153 }
 0x129   :  { %v106_v22 = vadd.f32 %v154_v20, %v105_v21 }
 0x12b   :  { %155 = vtanh.f32 %v106_v22 }
 0x131   :  { %v156_v23 = vpop.eup %155 }
 0x132   :  { %v109_v25 = vadd.f32 %v156_v23, %v108_v24 }
 0x134   :  { %157 = vtanh.f32 %v109_v25 }
 0x13a   :  { %v158_v26 = vpop.eup %157 }
 0x13b   :  { %v112_v28 = vadd.f32 %v158_v26, %v111_v27 }
 0x13d   :  { %159 = vtanh.f32 %v112_v28 }
 0x143   :  { %v160_v29 = vpop.eup %159 }
 0x144   :  { %v115_v31 = vadd.f32 %v160_v29, %v114_v30 }
 0x146   :  { %161 = vtanh.f32 %v115_v31 }
 0x14c   :  { %v162_v32 = vpop.eup %161 }
 0x14d   :  { %v118_v34 = vadd.f32 %v162_v32, %v117_v33 }
 0x14f   :  { %163 = vtanh.f32 %v118_v34 }
 0x155   :  { %v164_v35 = vpop.eup %163 }
 0x156   :  { %121 = vst.msk [vmem:[#allocation8] sm:$0x1] %vm49_vm2, %v164_v35 }
 0x157   :  { %132 = dma.vmem_to_hbm [thread:$0]  %s128_s24, 16, %s130_s27, [#allocation5]  }
 0x158   :  { %241 = dma.done.wait [#allocation5], 16  }
 0x159   :  { %242 = vsyncadd [#allocation5], 4294967280 }
 0x15a   :  { %137 = vsyncpa [#allocation4], 1 }
 0x15b   :  { %138 = vsyncpa [#allocation7], 1 }
 0x15c   :  { %139 = vsyncpa [#allocation5], 1 }

</bundles_post_ra>
